<compile_context>
chip_gen: v7x
topology: tpu7x:2x2x1
jax: 0.10.0
libtpu: 0.0.40
codegen_flags: <defaults>
</compile_context>

<pallas_src>
import jax
import jax.numpy as jnp
import numpy as np
from jax.experimental import pallas as pl
from jax.experimental.pallas import tpu as pltpu

LANES = 128
_TARGET_BLOCK_BYTES = 1 << 20       # ~1 MiB per operand block
_MAX_SINGLE_BLOCK_BYTES = 4 << 20   # allow an un-tiled rows dim only if small


def _round_up(x, m):
    return (x + m - 1) // m * m


def _sublane_align(itemsize):
    # f32 -> 8, bf16 -> 16, int8/fp8 -> 32 (sub-32-bit dtypes pack sublanes).
    return max(8, 32 // itemsize)


def _plan_tiling(n, itemsize):
    """Pick (cols, rows, tile_rows) with n == cols * rows, cols % 128 == 0 and
    tile_rows a divisor of rows.  Returns None if no acceptable tiling."""
    sub = _sublane_align(itemsize)
    best_score, best = None, None
    for cols in (2048, 1024, 512, 256, 128):
        if n % cols:
            continue
        rows = n // cols
        max_tr = max(1, _TARGET_BLOCK_BYTES // (cols * itemsize))
        tile_rows = 0
        t = (min(rows, max_tr) // sub) * sub
        while t >= sub:
            if rows % t == 0:
                tile_rows = t
                break
            t -= sub
        if tile_rows == 0:
            # No sublane-aligned divisor; a block dim equal to the full array
            # dim is always a legal layout, but only accept it when small.
            if rows * cols * itemsize <= _MAX_SINGLE_BLOCK_BYTES:
                tile_rows = rows
            else:
                continue
        score = (tile_rows % sub == 0, tile_rows * cols)
        if best_score is None or score > best_score:
            best_score, best = score, (cols, rows, tile_rows)
    return best


def _plan(n, itemsize):
    """Returns (n_pad, cols, rows, tile_rows) with n_pad >= n."""
    sub = _sublane_align(itemsize)
    for pad_unit in (LANES, sub * LANES):
        n_pad = _round_up(n, pad_unit)
        plan = _plan_tiling(n_pad, itemsize)
        if plan is not None:
            return (n_pad,) + plan
    raise AssertionError("unreachable: cols=128 always tiles a sub*128-aligned n")


def gated_af_kernel(t_ref, s_ref, o_ref):
    # Elementwise gated activation on the current (1, tile_rows, cols) block.
    # Compute in f32 (matches PyTorch numerics for low-precision inputs).
    t = t_ref[...].astype(jnp.float32)
    s = s_ref[...].astype(jnp.float32)
    o_ref[...] = (jnp.tanh(t) * jax.nn.sigmoid(s)).astype(o_ref.dtype)


def gated_af(x):
    """x: (B, 2C, H, W) -> (B, C, H, W); tanh(x[:, :C]) * sigmoid(x[:, C:])."""
    B, C2, H, W = x.shape
    assert C2 % 2 == 0, "channel dim must be even for chunk(2, dim=1)"
    C = C2 // 2
    N = C * H * W
    itemsize = jnp.dtype(x.dtype).itemsize

    n_pad, cols, rows, tile_rows = _plan(N, itemsize)

    # Free contiguous view: row 2*b is batch b's tanh half, row 2*b+1 its
    # sigmoid half.  No pre-split copy of x.
    x_halves = x.reshape(B * 2, N)
    if n_pad != N:
        # Rare path (half size not a multiple of 128): pad once.
        # TODO(synk): this pad is one extra HBM copy; a masked tail block would avoid it.
        x_halves = jnp.pad(x_halves, ((0, 0), (0, n_pad - N)))
    x_tiled = x_halves.reshape(B * 2, rows, cols)

    grid = (B, rows // tile_rows)
    block = (1, tile_rows, cols)
    block_bytes = tile_rows * cols * itemsize
    # 2 inputs + 1 output, double-buffered, plus headroom.
    vmem_limit = int(max(16 << 20, 8 * block_bytes))

    out = pl.pallas_call(
        gated_af_kernel,
        out_shape=jax.ShapeDtypeStruct((B, rows, cols), x.dtype),
        grid=grid,
        in_specs=[
            # Same HBM array passed twice; the index maps pick the two halves.
            pl.BlockSpec(block, lambda b, j: (2 * b, j, 0)),
            pl.BlockSpec(block, lambda b, j: (2 * b + 1, j, 0)),
        ],
        out_specs=pl.BlockSpec(block, lambda b, j: (b, j, 0)),
        compiler_params=pltpu.CompilerParams(
            dimension_semantics=("parallel", "parallel"),
            vmem_limit_bytes=vmem_limit,
        ),
    )(x_tiled, x_tiled)

    out_flat = out.reshape(B, n_pad)
    if n_pad != N:
        out_flat = out_flat[:, :N]
    return out_flat.reshape(B, C, H, W)


if __name__ == "__main__":
    key = jax.random.PRNGKey(0)

    # B=2, 2C=8 channels (each gated half has 4 channels), 16x16 spatial.
    x = jax.random.normal(key, (2, 8, 16, 16), dtype=jnp.float32)
    out = jax.block_until_ready(gated_af(x))

    x_t, x_s = jnp.split(x, 2, axis=1)
    ref = jnp.tanh(x_t) * jax.nn.sigmoid(x_s)
    np.testing.assert_allclose(np.asarray(out), np.asarray(ref), rtol=1e-5, atol=1e-5)
    assert out.shape == (2, 4, 16, 16)

    # Non-lane-aligned half size (3*10*10 = 300 elems) exercises the padding path.
    x2 = jax.random.normal(jax.random.PRNGKey(1), (2, 6, 10, 10), dtype=jnp.float32)
    out2 = jax.block_until_ready(gated_af(x2))
    x2_t, x2_s = jnp.split(x2, 2, axis=1)
    ref2 = jnp.tanh(x2_t) * jax.nn.sigmoid(x2_s)
    np.testing.assert_allclose(np.asarray(out2), np.asarray(ref2), rtol=1e-5, atol=1e-5)
    assert out2.shape == (2, 3, 10, 10)

    print("KERNEL_OK")
</pallas_src>

<mosaic_0001>
module attributes {stable_mosaic.version = 11 : i64} {
  func.func @gated_af_kernel(%arg0: i32, %arg1: i32, %arg2: memref<1x8x128xf32, #tpu.memory_space<vmem>>, %arg3: memref<1x8x128xf32, #tpu.memory_space<vmem>>, %arg4: memref<1x8x128xf32, #tpu.memory_space<vmem>>) attributes {dimension_semantics = [#tpu.dimension_semantics<parallel>, #tpu.dimension_semantics<parallel>], iteration_bounds = array<i64: 2, 1>, scalar_prefetch = 0 : i64, scratch_operands = 0 : i64, tpu.core_type = #tpu.core_type<tc>, window_params = [{transform_indices = @transform_0, window_bounds = array<i64: 1, 8, 128>}, {transform_indices = @transform_1, window_bounds = array<i64: 1, 8, 128>}, {transform_indices = @transform_2, window_bounds = array<i64: 1, 8, 128>}]} {
    %c0 = arith.constant 0 : index
    %c0_0 = arith.constant 0 : index
    %c0_1 = arith.constant 0 : index
    %0 = vector.load %arg2[%c0, %c0_0, %c0_1] : memref<1x8x128xf32, #tpu.memory_space<vmem>>, vector<1x8x128xf32>
    %c0_2 = arith.constant 0 : index
    %c0_3 = arith.constant 0 : index
    %c0_4 = arith.constant 0 : index
    %1 = vector.load %arg3[%c0_2, %c0_3, %c0_4] : memref<1x8x128xf32, #tpu.memory_space<vmem>>, vector<1x8x128xf32>
    %2 = math.tanh %0 : vector<1x8x128xf32>
    %3 = arith.negf %1 : vector<1x8x128xf32>
    %4 = math.exp %3 : vector<1x8x128xf32>
    %cst = arith.constant 1.000000e+00 : f32
    %5 = vector.broadcast %cst : f32 to vector<1x8x128xf32>
    %6 = arith.addf %5, %4 : vector<1x8x128xf32>
    %7 = arith.divf %5, %6 : vector<1x8x128xf32>
    %8 = arith.mulf %2, %7 : vector<1x8x128xf32>
    %c0_5 = arith.constant 0 : index
    %c0_6 = arith.constant 0 : index
    %c0_7 = arith.constant 0 : index
    %9 = vector.load %arg4[%c0_5, %c0_6, %c0_7] : memref<1x8x128xf32, #tpu.memory_space<vmem>>, vector<1x8x128xf32>
    tpu.vector_store %arg4[%c0_5, %c0_6, %c0_7], %8 {strides = array<i32>} : memref<1x8x128xf32, #tpu.memory_space<vmem>>, vector<1x8x128xf32>,
    return
  }
  func.func @transform_0(%arg0: i32, %arg1: i32) -> (i32, i32, i32) {
    %c2_i32 = arith.constant 2 : i32
    %0 = arith.muli %c2_i32, %arg0 : i32
    %c0_i32 = arith.constant 0 : i32
    %c0_i32_0 = arith.constant 0 : i32
    return %0, %arg1, %c0_i32 : i32, i32, i32
  }
  func.func @transform_1(%arg0: i32, %arg1: i32) -> (i32, i32, i32) {
    %c2_i32 = arith.constant 2 : i32
    %0 = arith.muli %c2_i32, %arg0 : i32
    %c1_i32 = arith.constant 1 : i32
    %1 = arith.addi %0, %c1_i32 : i32
    %c0_i32 = arith.constant 0 : i32
    %c0_i32_0 = arith.constant 0 : i32
    return %1, %arg1, %c0_i32 : i32, i32, i32
  }
  func.func @transform_2(%arg0: i32, %arg1: i32) -> (i32, i32, i32) {
    %c0_i32 = arith.constant 0 : i32
    %c0_i32_0 = arith.constant 0 : i32
    return %arg0, %arg1, %c0_i32 : i32, i32, i32
  }
}

</mosaic_0001>

<bundles_post_ra>
// kernel: tpu_custom_call.1
= control target key start
LH: loop header
LB: loop body
LE: loop exit
PB: predicated region body
PF: predicated region fallthrough
CT: control target
= control target key end

     0   :  { %s1030_s0 = inlined_call_operand.hbm [shape: f32[4,8,128], index: 0, kind: input, shape index: {}]   ;;  %s1031_s1 = inlined_call_operand.hbm [shape: f32[4,8,128], index: 1, kind: input, shape index: {}]   ;;  %s1032_s2 = inlined_call_operand.hbm [shape: f32[2,8,128], index: 2, kind: output, shape index: {}]  }
   0x1   :  { %1041 = sst [smem:[#allocation13_spill]] %s1030_s0 }
   0x2   :  { %7 = vsyncpa [#allocation3], 0 }
   0x3   :  { %9 = vsyncpa [#allocation3 + $0x1], 0 }
   0x4   :  { %10 = vsyncpa [#allocation6], 0 }
   0x5   :  { %12 = vsyncpa [#allocation6 + $0x1], 0 }
   0x6   :  { %13 = vsyncpa [#allocation4], 0 }
   0x7   :  { %15 = vsyncpa [#allocation4 + $0x1], 0  ;;  %s722_s9 = smov 0   ;;  %s724_s10 = smov 0  }
   0x8   :  { %s726_s11 = smov 0   ;;  %s728_s12 = smov 0  }
   0x9   :  { %s730_s13 = smov 0   ;;  %s732_s14 = smov 0  }
   0xa   :  { %s734_s15 = smov 0   ;;  %s736_s16 = smov 0  }
   0xb   :  { %s738_s17 = smov 0   ;;  %s740_s18 = smov 0  }
   0xc   :  { %s742_s19 = smov 0   ;;  %s744_s20 = smov 0  }
   0xd LB: > { %s361_s21 = sadd.s32 4294967295, %s702_s20   ;;  %s362_s22 = sadd.s32 4294967294, %s702_s20   ;;  %s702_s20 = sphi %s744_s20, %s21_s20   ;;  %s698_s19 = sphi %s742_s19, %s1078_s19   ;;  %s694_s18 = sphi %s740_s18, %s1077_s18   ;;  %s690_s17 = sphi %s738_s17, %s1076_s17   ;;  %s686_s16 = sphi %s736_s16, %s1075_s16   ;;  %s682_s15 = sphi %s734_s15, %s1074_s15   ;;  %s678_s14 = sphi %s732_s14, %s1073_s14   ;;  %s674_s13 = sphi %s730_s13, %s1072_s13   ;;  %s670_s12 = sphi %s728_s12, %s1071_s12   ;;  %s666_s11 = sphi %s726_s11, %s1070_s11   ;;  %s662_s10 = sphi %s724_s10, %s1069_s10   ;;  %s658_s9 = sphi %s722_s9, %s1068_s9  }
   0xe   : > { %s33_s23 = sadd.s32 1, %s698_s19  ;;  %s363_s24 = sshll.u32 %s698_s19, 1 }
   0xf   : > { %p35_p0 = scmp.ge.s32.totalorder %s33_s23, 2  ;;  %s44_s25 = sadd.s32 1, %s690_s17 }
  0x10   : > { %p51_p1 = scmp.ne.s32.totalorder %s690_s17, %s686_s16  ;;  %p1034_p2 = scmp.eq.s32.totalorder %s702_s20, 0 }
  0x11   : > { %s1080_s23 = smov (%p35_p0, %s33_s23), 0  ;;  %p57_p4 = scmp.ne.s32.totalorder %s686_s16, %s682_s15 }
  0x12   : > { %1042 = sst [smem:[#allocation11_spill]] %s1080_s23  ;;  %p792_p3 = por %p1034_p2, %p51_p1 }
  0x13   : > { %s364_s27 = sshll.u32 %s1080_s23, 1  ;;  %p798_p5 = scmp.eq.s32.totalorder %s361_s21, 0 }
  0x14   : > { %s39_s29 = ssub.s32 %s363_s24, %s364_s27  ;;  %s68_s30 = sadd.s32 1, %s363_s24 }
  0x15   : > { %s1044_s28 = scalar_select %p798_p5, 1, 0 }
  0x16   : > { %p42_p6 = scmp.eq.s32.totalorder %s39_s29, 0  ;;  %p804_p7 = por %p798_p5, %p57_p4 }
  0x17   : > { %s70_s4 = sadd.s32 1, %s364_s27  ;;  %s99_s5 = ssub.s32 %s698_s19, %s1080_s23 }
  0x18   : > { %s1045_s3 = scalar_select %p804_p7, 1, 0 }
  0x19   : > { %s811_s6 = scalar_select %p42_p6, %s690_s17, %s44_s25  }
  0x1a   : > { %s71_s7 = ssub.s32 %s68_s30, %s70_s4  ;;  %p102_p8 = scmp.eq.s32.totalorder %s99_s5, 0 }
  0x1b   : > { %1046 = sst [smem:[#allocation12_spill]] %s811_s6  ;;  %p813_p9 = scmp.eq.s32.totalorder %s71_s7, 0 }
  0x1c   : > { %s104_s15 = sadd.s32 1, %s666_s11  ;;  %p114_p10 = scmp.ne.s32.totalorder %s666_s11, %s662_s10 }
  0x1d   : > { %s819_s24 = scalar_select %p102_p8, %s666_s11, %s104_s15  }
  0x1e   : > { %p115_p11 = scmp.eq.s32.totalorder %s361_s21, 1  ;;  %p120_p12 = scmp.ne.s32.totalorder %s662_s10, %s658_s9 }
  0x1f   : > { %p121_p13 = scmp.eq.s32.totalorder %s362_s22, 1  ;;  %p1036_p6 = scmp.lt.s32.totalorder %s702_s20, 2 }
  0x20   : > { %p825_p0 = por %p115_p11, %p114_p10  ;;  %s141_s29 = sand.u32 1, %s690_s17  }
  0x21   : > { %p830_p4 = por %p121_p13, %p120_p12  ;;  %s1035_s30 = sshll.u32 %s698_s19, 8 }
  0x22   : > { %s1048_s25 = scalar_select %p825_p0, 1, 0 }
  0x23   : > { %s1049_s27 = scalar_select %p830_p4, 1, 0 }
  0x24   : > { %s369_s4 = sshll.u32 %s141_s29, 3  ;;  %s1050_s0 = sld [smem:[#allocation13_spill]] }
  0x25   : > { %s145_s22 = scalar_lea.vmem [#allocation2], %s369_s4  ;;  %p848_p8 = pnand %p1036_p6, %p792_p3 }
  0x26   : > { %s154_s15 = sshll.u32 %s145_s22, 4  ;;  %s142_s5 = scalar_lea.sflag [#allocation3], %s141_s29  ;;  %s852_s15 = int_to_ptr.vmem [resolvable:$true] %s154_s15 }
  0x27   : > { %p509_p13 = pneg %p848_p8 }
  0x2a   : > { %s842_s21 = scalar_lea.hbm %s1050_s0, %s1035_s30  ;;  %s512_s22 = scalar_lea.hbm %s1050_s0, 512 }
  0x2b   : > { %s507_s7 = scalar_lea.hbm %s842_s21, 128  ;;  %p513_p3 = scmp.lt.u32.totalorder %s842_s21, %s1050_s0 }
  0x2c   : > { %p508_p12 = scmp.ne.s32.totalorder %s842_s21, %s507_s7  ;;  %p514_p6 = scmp.lt.u32.totalorder %s512_s22, %s507_s7 }
  0x2d   : > { %p516_p11 = scmp.lt.u32.totalorder %s507_s7, %s842_s21 }
  0x2e   : > { %p510_p1 = pnand %p509_p13, %p508_p12  ;;  %p515_p10 = por %p514_p6, %p513_p3 }
  0x30   : > { %p511_p2 = pneg %p510_p1  ;;  %p517_p4 = por %p516_p11, %p515_p10 }
  0x32   : > { %p518_p0 = pnand %p517_p4, %p511_p2 }
  0x34   : > { %521 = shalt.err (!%p518_p0)
}
  0x35   : > { %s522_s29 = scalar_lea.vmem %s852_s15, 128  ;;  %s704_s26 = smov [#allocation2]  }
  0x36   : > { %p523_p1 = scmp.ne.s32.totalorder %s852_s15, %s522_s29  ;;  %s527_s4 = sshll.u32 %s704_s26, 4  ;;  %s528_s4 = int_to_ptr.vmem [resolvable:$false] %s527_s4 }
  0x37   : > { %s529_s6 = scalar_lea.vmem %s528_s4, 256  ;;  %p530_p5 = scmp.lt.s32.totalorder %s852_s15, %s528_s4 }
  0x38   : > { %p525_p12 = pnand %p523_p1, %p509_p13  ;;  %p531_p6 = scmp.lt.s32.totalorder %s529_s6, %s522_s29 }
  0x3a   : > { %p526_p7 = pneg %p525_p12  ;;  %p532_p3 = por %p531_p6, %p530_p5 }
  0x3c   : > { %p533_p10 = pnand %p532_p3, %p526_p7 }
  0x3e   : > { %536 = shalt.err (!%p533_p10)
}
  0x3f   : > { %395 = dma.hbm_to_vmem [thread:$0]  (!%p848_p8), %s842_s21, 128, %s852_s15, %s142_s5  }
  0x40   : > { %p1052_p2 = scmp.lt.s32.totalorder %s702_s20, 3  ;;  %p1053_p5 = scmp.ge.s32.totalorder %s702_s20, 1 }
  0x41   : > { %s76_s30 = sadd.s32 1, %s678_s14  ;;  %p83_p0 = scmp.ne.s32.totalorder %s678_s14, %s674_s13 }
  0x42   : > { %p885_p7 = pnand %p1053_p5, %p1052_p2  ;;  %p89_p4 = scmp.ne.s32.totalorder %s674_s13, %s670_s12 }
  0x43   : > { %s893_s7 = scalar_select %p813_p9, %s678_s14, %s76_s30  }
  0x44   : > { %s161_s22 = sand.u32 1, %s678_s14   ;;  %s1055_s29 = sshll.u32 %s698_s19, 8 }
  0x45   : > { %s294_s6 = scalar_lea.hbm %s1031_s1, %s1055_s29  ;;  %p1056_p11 = scmp.eq.s32.totalorder %s702_s20, 0 }
  0x46   : > { %p1057_p13 = scmp.ne.s32.totalorder %s1044_s28, 0  ;;  %s372_s15 = sshll.u32 %s161_s22, 3 }
  0x47   : > { %p85_p8 = por %p83_p0, %p1056_p11  ;;  %s913_s5 = scalar_lea.hbm %s294_s6, 128 }
  0x48   : > { %p909_p1 = por %p89_p4, %p1057_p13  ;;  %s165_s12 = scalar_lea.vmem [#allocation5], %s372_s15 }
  0x49   : > { %s175_s8 = sshll.u32 %s165_s12, 4  ;;  %p1059_p9 = scmp.lt.s32.totalorder %s702_s20, 2  ;;  %s921_s8 = int_to_ptr.vmem [resolvable:$true] %s175_s8 }
  0x4a   : > { %s1058_s21 = scalar_select %p909_p1, 1, 0 }
  0x4b   : > { %p917_p12 = pnand %p1059_p9, %p85_p8  ;;  %s162_s28 = scalar_lea.sflag [#allocation6], %s161_s22 }
  0x4c   : > { %s567_s29 = scalar_lea.hbm %s294_s6, 256  ;;  %s542_s15 = scalar_lea.hbm %s1031_s1, 512 }
  0x4d   : > { %p538_p6 = scmp.ne.s32.totalorder %s913_s5, %s567_s29  ;;  %p539_p3 = pneg %p917_p12 }
  0x4e   : > { %p543_p5 = scmp.lt.u32.totalorder %s913_s5, %s1031_s1  ;;  %p544_p0 = scmp.lt.u32.totalorder %s542_s15, %s567_s29 }
  0x4f   : > { %p540_p10 = pnand %p539_p3, %p538_p6  ;;  %p546_p11 = scmp.lt.u32.totalorder %s567_s29, %s913_s5 }
  0x50   : > { %p545_p4 = por %p544_p0, %p543_p5 }
  0x51   : > { %p541_p2 = pneg %p540_p10 }
  0x52   : > { %p547_p8 = por %p546_p11, %p545_p4 }
  0x54   : > { %p548_p13 = pnand %p547_p8, %p541_p2 }
  0x56   : > { %551 = shalt.err (!%p548_p13)
}
  0x57   : > { %s552_s22 = scalar_lea.vmem %s921_s8, 128  ;;  %s705_s6 = smov [#allocation5]  }
  0x58   : > { %p553_p9 = scmp.ne.s32.totalorder %s921_s8, %s552_s22  ;;  %s557_s26 = sshll.u32 %s705_s6, 4  ;;  %s558_s26 = int_to_ptr.vmem [resolvable:$false] %s557_s26 }
  0x59   : > { %s559_s0 = scalar_lea.vmem %s558_s26, 256  ;;  %p560_p1 = scmp.lt.s32.totalorder %s921_s8, %s558_s26 }
  0x5a   : > { %p555_p6 = pnand %p553_p9, %p539_p3  ;;  %p561_p5 = scmp.lt.s32.totalorder %s559_s0, %s552_s22 }
  0x5c   : > { %p556_p10 = pneg %p555_p6  ;;  %p562_p0 = por %p561_p5, %p560_p1 }
  0x5e   : > { %p563_p4 = pnand %p562_p0, %p556_p10 }
  0x60   : > { %566 = shalt.err (!%p563_p4)
}
  0x61   : > { %398 = dma.hbm_to_vmem [thread:$0]  (!%p917_p12), %s913_s5, 128, %s921_s8, %s162_s28  }
  0x62   : > { %184 = sbr.rel (%p885_p7) target bundleno = 153 (0x99), region = 28  ;;  %s186_s29 = sand.u32 (!%p885_p7), 1, %s686_s16  }
  0x63   : > { %s376_s4 = sshll.u32 (!%p885_p7), %s186_s29, 3  ;;  %s187_s15 = scalar_lea.sflag (!%p885_p7), [#allocation3], %s186_s29 }
  0x64   : > { %s190_s12 = scalar_lea.vmem (!%p885_p7), [#allocation2], %s376_s4  ;;  %p1061_p3 = scmp.ne.s32.totalorder (!%p885_p7), %s1045_s3, 0 }
  0x69   : > { %645 = dma.done.wait (%p1061_p3), %s187_s15, 128  }
  0x6a   : > { %647 = vsyncadd (%p1061_p3), %s187_s15, 4294967168  ;;  %s195_s30 = sand.u32 1, %s674_s13   ;;  %p1062_p1 = scmp.ne.s32.totalorder %s1058_s21, 0 }
  0x6b   : > { %s377_s22 = sshll.u32 %s195_s30, 3  ;;  %s196_s6 = scalar_lea.sflag [#allocation6], %s195_s30 }
  0x6c   : > { %s199_s5 = scalar_lea.vmem [#allocation5], %s377_s22 }
  0x6d   : > { %649 = dma.done.wait (%p1062_p1), %s196_s6, 128  }
  0x6e   : > { %651 = vsyncadd (%p1062_p1), %s196_s6, 4294967168  ;;  %v229_v0 = vld [vmem:[%s199_s5] sm:$0xff]  ;;  %v228_v2 = vld [vmem:[%s190_s12] sm:$0xff]  ;;  %s222_s3 = sand.u32 1, %s662_s10   ;;  %s381_s26 = sshll.u32 %s694_s18, 7 }
  0x6f   : > { %v379_v1 = vmul.f32 -1.442695, %v229_v0  ;;  %s378_s23 = sshll.u32 %s222_s3, 3  ;;  %s966_s29 = scalar_lea.hbm %s1032_s2, %s381_s26 }
  0x70   : > { %s224_s8 = scalar_lea.vmem [#allocation7], %s378_s23  ;;  %s240_s4 = scalar_lea.sflag [#allocation4], %s222_s3 }
  0x71   : > { %501 = vpow2.f32 %v379_v1  ;;  %s254_s28 = sshll.u32 %s224_s8, 4  ;;  %p1063_p12 = scmp.ne.s32.totalorder %s1048_s25, 0  ;;  %s961_s28 = int_to_ptr.vmem [resolvable:$true] %s254_s28 }
  0x72   : > { %503 = vtanh.f32 %v228_v2  ;;  %s568_s15 = scalar_lea.vmem %s961_s28, 128  ;;  %s706_s18 = smov [#allocation7]  }
  0x73   : > { %p569_p7 = scmp.ne.s32.totalorder %s961_s28, %s568_s15  ;;  %s572_s12 = sshll.u32 %s706_s18, 4  ;;  %s573_s12 = int_to_ptr.vmem [resolvable:$false] %s572_s12 }
  0x74   : > { %s574_s30 = scalar_lea.vmem %s573_s12, 256  ;;  %p575_p8 = scmp.lt.s32.totalorder %s961_s28, %s573_s12 }
  0x75   : > { %p570_p2 = pnand %p569_p7, %p1063_p12  ;;  %p576_p13 = scmp.lt.s32.totalorder %s574_s30, %s568_s15 }
  0x77   : > { %p571_p11 = pneg %p570_p2  ;;  %p577_p9 = por %p576_p13, %p575_p8 }
  0x79   : > { %p578_p6 = pnand %p577_p9, %p571_p11 }
  0x7b   : > { %v502_v3 = vpop.eup %501 }
  0x7c   : > { %v234_v4 = vadd.f32 1.0, %v502_v3  ;;  %v504_v5 = vpop.eup %503 }
  0x7e   : > { %505 = vrcp.f32 %v234_v4 }
  0x88   : > { %v506_v6 = vpop.eup %505 }
  0x89   : > { %v237_v7 = vmul.f32 %v506_v6, %v504_v5 }
  0x8b   : > { %238 = vst [vmem:[%s224_s8] sm:$0xff] %v237_v7 }
  0x8c   : > { %581 = shalt.err (!%p578_p6)
}
  0x8d   : > { %s582_s22 = scalar_lea.hbm %s966_s29, 128  ;;  %s586_s3 = scalar_lea.hbm %s1032_s2, 256 }
  0x8e   : > { %p583_p10 = scmp.ne.s32.totalorder %s966_s29, %s582_s22  ;;  %p587_p4 = scmp.lt.u32.totalorder %s966_s29, %s1032_s2 }
  0x8f   : > { %p588_p3 = scmp.lt.u32.totalorder %s586_s3, %s582_s22  ;;  %p590_p7 = scmp.lt.u32.totalorder %s582_s22, %s966_s29 }
  0x90   : > { %p584_p5 = pnand %p583_p10, %p1063_p12 }
  0x91   : > { %p589_p1 = por %p588_p3, %p587_p4 }
  0x92   : > { %p585_p0 = pneg %p584_p5 }
  0x93   : > { %p591_p2 = por %p590_p7, %p589_p1 }
  0x95   : > { %p592_p11 = pnand %p591_p2, %p585_p0 }
  0x97   : > { %595 = shalt.err (!%p592_p11)
}
  0x98   : > { %390 = dma.vmem_to_hbm [thread:$0]  (%p1063_p12), %s961_s28, 128, %s966_s29, %s240_s4  }
  0x99 PF: > { %s266_s26 = sand.u32 1, %s658_s9   ;;  %p1064_p8 = scmp.ne.s32.totalorder %s1049_s27, 0 }
  0x9a   : > { %p1065_p13 = scmp.ge.s32.totalorder %s702_s20, 2  ;;  %s267_s21 = scalar_lea.sflag [#allocation4], %s266_s26 }
  0x9c   : > { %p400_p9 = pnand %p1065_p13, %p1064_p8 }
  0x9e   : > { %653 = dma.done.wait (!%p400_p9), %s267_s21, 128  }
  0x9f   : > { %655 = vsyncadd (!%p400_p9), %s267_s21, 4294967168  ;;  %s21_s20 = sadd.s32 1, %s702_s20   ;;  %s1066_s25 = sld [smem:[#allocation12_spill]] }
  0xa0   : > { %p18_p6 = scmp.ge.s32.totalorder %s21_s20, 4   ;;  %s1067_s28 = sld [smem:[#allocation11_spill]] }
  0xa1   : > { %s1068_s9 = smov %s662_s10  ;;  %s1069_s10 = smov %s666_s11 }
  0xa2   : > { %s1070_s11 = smov %s819_s24  ;;  %s1071_s12 = smov %s674_s13 }
  0xa3   : > { %s1072_s13 = smov %s678_s14  ;;  %s1073_s14 = smov %s893_s7 }
  0xa4   : > { %s1074_s15 = smov %s686_s16  ;;  %s1075_s16 = smov %s690_s17 }
  0xa5   : > { %s1076_s17 = smov %s1066_s25  ;;  %s1077_s18 = smov %s698_s19 }
  0xa6   : > { %s1078_s19 = smov %s1067_s28  ;;  %20 = sbr.rel (!%p18_p6) target bundleno = 13 (0xd), region = 86 }
  0xad   :  { %272 = vsyncpa [#allocation3], 1 }
  0xae   :  { %274 = vsyncpa [#allocation3 + $0x1], 1 }
  0xaf   :  { %275 = vsyncpa [#allocation6], 1 }
  0xb0   :  { %277 = vsyncpa [#allocation6 + $0x1], 1 }
  0xb1   :  { %278 = vsyncpa [#allocation4], 1 }
  0xb2   :  { %280 = vsyncpa [#allocation4 + $0x1], 1 }

</bundles_post_ra>
